<compile_context>
chip_gen: v7x
topology: tpu7x:2x2x1
jax: 0.10.0
libtpu: 0.0.40
codegen_flags: <defaults>
</compile_context>

<pallas_src>
import functools

import jax
import jax.numpy as jnp
from jax.experimental import pallas as pl
from jax.experimental.pallas import tpu as pltpu


def _round_up(v, m):
    return (v + m - 1) // m * m


def _pick_t_chunk(seq_len, cap=128):
    """Largest divisor of seq_len that is <= cap (keeps VMEM bounded)."""
    t = min(seq_len, cap)
    while seq_len % t:
        t -= 1
    return t


def _rnn_seq_kernel(x_ref, wx_ref, b_ref, wh_ref, wl_ref, bl_ref,
                    y_ref, h_carry, h_buf, *, unroll):
    # x_ref   : (T, Bp, Dp)  f32  chunk of timesteps, time-major, B/D padded
    # wx_ref  : (Dp, Hp)     bf16 transposed + padded input-projection weight
    # b_ref   : (1, Hp)      f32  combined bias (bx + bh), H-padded
    # wh_ref  : (Hp, Hp)     bf16 transposed + padded recurrent weight
    # wl_ref  : (Hp, Op)     bf16 transposed + padded head weight
    # bl_ref  : (1, Op)      f32  head bias, O-padded
    # y_ref   : (T, Bp, Op)  f32  per-timestep head outputs for this chunk
    # h_carry : (Bp, Hp)     f32  hidden state carried across grid steps
    # h_buf   : (T, Bp, Hp)  f32  scratch: xw staging, then hidden states
    T, Bp, Dp = x_ref.shape
    Hp = wh_ref.shape[0]
    Op = y_ref.shape[-1]

    @pl.when(pl.program_id(0) == 0)
    def _():
        # initial hidden state = zeros (matches ht=None path in PyTorch)
        h_carry[...] = jnp.zeros_like(h_carry)

    # Batched input projection for the whole chunk (off the serial path):
    #   xw[t] = x[t] @ wx^T + (bx + bh)
    # Bp % 8 == 0 and Dp % 128 == 0, so the flatten is tile-aligned.
    x_bf = x_ref[...].reshape(T * Bp, Dp).astype(jnp.bfloat16)
    xw = jnp.dot(x_bf, wx_ref[...], preferred_element_type=jnp.float32)
    h_buf[...] = (xw + b_ref[...]).reshape(T, Bp, Hp)

    # Serial recurrence: h_t = tanh(xw_t + h_{t-1} @ wh^T)
    # Only the (Bp, Hp) x (Hp, Hp) bf16 matmul + tanh sit on the critical path.
    def step(t, h):
        h_new = jnp.tanh(
            h_buf[t]
            + jnp.dot(h.astype(jnp.bfloat16), wh_ref[...],
                      preferred_element_type=jnp.float32))
        h_buf[t] = h_new
        return h_new

    h_final = jax.lax.fori_loop(0, T, step, h_carry[...], unroll=unroll)
    h_carry[...] = h_final

    # Fused per-step linear head for the whole chunk (batched, off the serial
    # path): y[t] = h[t] @ wl^T + bl.  Padded H columns of h are exactly 0 and
    # wl^T's padded rows are 0, so the padded contraction is exact.  Padded
    # batch rows produce garbage y rows; the wrapper slices them off.
    h_bf = h_buf[...].reshape(T * Bp, Hp).astype(jnp.bfloat16)
    y = jnp.dot(h_bf, wl_ref[...], preferred_element_type=jnp.float32)
    y_ref[...] = (y + bl_ref[...]).reshape(T, Bp, Op).astype(y_ref.dtype)


def rnn_forward(x, params, *, t_chunk=None):
    """x: (batch, seq, input_dim) float32. Returns (batch, seq, output_dim)."""
    wx, bx, wh, bh, wl, bl = (params["wx"], params["bx"], params["wh"],
                              params["bh"], params["wl"], params["bl"])
    B, S, D = x.shape
    H = wx.shape[0]
    O = wl.shape[0]

    if t_chunk is None:
        t_chunk = _pick_t_chunk(S)
    assert S % t_chunk == 0, "t_chunk must divide the sequence length"
    n_chunks = S // t_chunk

    # Hardware-friendly padding: batch -> multiple of 8 sublanes; hidden,
    # input and output dims -> multiples of 128 lanes.  Zero padding is exact
    # (tanh(0)=0 and padded weight rows/cols are zero, so padded hidden
    # columns stay exactly 0 even with the bf16 cast).
    Bp = _round_up(B, 8)
    Hp = _round_up(H, 128)
    Dp = _round_up(D, 128)
    Op = _round_up(O, 128)

    x_tm = jnp.transpose(x, (1, 0, 2))                              # (S, B, D)
    x_tm = jnp.pad(x_tm, ((0, 0), (0, Bp - B), (0, Dp - D)))        # (S, Bp, Dp)

    bf16 = jnp.bfloat16
    wx_t = jnp.pad(wx.T, ((0, Dp - D), (0, Hp - H))).astype(bf16)   # (Dp, Hp)
    wh_t = jnp.pad(wh.T, ((0, Hp - H), (0, Hp - H))).astype(bf16)   # (Hp, Hp)
    wl_t = jnp.pad(wl.T, ((0, Hp - H), (0, Op - O))).astype(bf16)   # (Hp, Op)
    b = jnp.pad(bx + bh, (0, Hp - H)).reshape(1, Hp)                # (1, Hp) f32
    bl_p = jnp.pad(bl, (0, Op - O)).reshape(1, Op)                  # (1, Op) f32

    kernel = functools.partial(_rnn_seq_kernel, unroll=min(t_chunk, 8))

    y_tm = pl.pallas_call(
        kernel,
        out_shape=jax.ShapeDtypeStruct((S, Bp, Op), jnp.float32),
        grid_spec=pltpu.PrefetchScalarGridSpec(
            num_scalar_prefetch=0,
            grid=(n_chunks,),
            in_specs=[
                pl.BlockSpec((t_chunk, Bp, Dp), lambda c: (c, 0, 0)),  # x chunk
                pl.BlockSpec((Dp, Hp), lambda c: (0, 0)),              # wx^T
                pl.BlockSpec((1, Hp), lambda c: (0, 0)),               # bx + bh
                pl.BlockSpec((Hp, Hp), lambda c: (0, 0)),              # wh^T
                pl.BlockSpec((Hp, Op), lambda c: (0, 0)),              # wl^T
                pl.BlockSpec((1, Op), lambda c: (0, 0)),               # bl
            ],
            out_specs=pl.BlockSpec((t_chunk, Bp, Op), lambda c: (c, 0, 0)),
            scratch_shapes=[
                pltpu.VMEM((Bp, Hp), jnp.float32),            # h carry
                pltpu.VMEM((t_chunk, Bp, Hp), jnp.float32),   # per-chunk h / xw
            ],
        ),
        compiler_params=pltpu.CompilerParams(
            dimension_semantics=("arbitrary",),   # time axis is sequential
            vmem_limit_bytes=48 * 1024 * 1024,    # safe on v5e/v6e (128M) & v7x (64M)
        ),
    )(x_tm, wx_t, b, wh_t, wl_t, bl_p)

    # Drop padding; emit (batch, seq, out).  Only O (not H) bytes cross HBM.
    return jnp.transpose(y_tm[:, :B, :O], (1, 0, 2))


def init_params(key, input_dim, hidden_dim, output_dim):
    """Deterministic init mirroring nn.Linear shapes (PyTorch-style uniform)."""
    ks = jax.random.split(key, 6)

    def lin(kw, kb, out_d, in_d):
        bound = 1.0 / jnp.sqrt(in_d)
        w = jax.random.uniform(kw, (out_d, in_d), jnp.float32, -bound, bound)
        b = jax.random.uniform(kb, (out_d,), jnp.float32, -bound, bound)
        return w, b

    wx, bx = lin(ks[0], ks[1], hidden_dim, input_dim)    # rnn_cell.wx
    wh, bh = lin(ks[2], ks[3], hidden_dim, hidden_dim)   # rnn_cell.wh
    wl, bl = lin(ks[4], ks[5], output_dim, hidden_dim)   # linear head
    return {"wx": wx, "bx": bx, "wh": wh, "bh": bh, "wl": wl, "bl": bl}


def rnn_forward_ref(x, params):
    """Pure-JAX f32 reference implementing the PyTorch forward exactly."""
    wx, bx, wh, bh, wl, bl = (params["wx"], params["bx"], params["wh"],
                              params["bh"], params["wl"], params["bl"])
    B, S, D = x.shape
    H = wx.shape[0]
    h = jnp.zeros((B, H), jnp.float32)
    ys = []
    for t in range(S):
        xt = x[:, t, :]
        h = jnp.tanh(xt @ wx.T + bx + h @ wh.T + bh)   # RNN_cell.forward
        ys.append(h @ wl.T + bl)
    return jnp.stack(ys, axis=1)   # (batch, seq, output_dim)


if __name__ == "__main__":
    key = jax.random.PRNGKey(0)
    k_x, k_p = jax.random.split(key)

    batch, seq, input_dim, hidden_dim, output_dim = 2, 8, 4, 32, 8
    x = jax.random.normal(k_x, (batch, seq, input_dim), jnp.float32)
    params = init_params(k_p, input_dim, hidden_dim, output_dim)

    out = rnn_forward(x, params)
    out = jax.block_until_ready(out)

    ref = rnn_forward_ref(x, params)
    assert out.shape == (batch, seq, output_dim)
    # bf16 matmul inputs (f32 accumulation / bias / tanh) -> loosened tolerance
    # against the pure-f32 reference, per the performance review.
    assert jnp.allclose(out, ref, atol=5e-2, rtol=5e-2), "mismatch vs reference"

    print("KERNEL_OK")
</pallas_src>

<mosaic_0001>
module attributes {stable_mosaic.version = 11 : i64} {
  func.func @_rnn_seq_kernel(%arg0: i32, %arg1: memref<8x8x128xf32, #tpu.memory_space<vmem>>, %arg2: memref<128x128xbf16, #tpu.memory_space<vmem>>, %arg3: memref<1x128xf32, #tpu.memory_space<vmem>>, %arg4: memref<128x128xbf16, #tpu.memory_space<vmem>>, %arg5: memref<128x128xbf16, #tpu.memory_space<vmem>>, %arg6: memref<1x128xf32, #tpu.memory_space<vmem>>, %arg7: memref<8x8x128xf32, #tpu.memory_space<vmem>>, %arg8: memref<8x128xf32, #tpu.memory_space<vmem>>, %arg9: memref<8x8x128xf32, #tpu.memory_space<vmem>>) attributes {dimension_semantics = [#tpu.dimension_semantics<arbitrary>], iteration_bounds = array<i64: 1>, scalar_prefetch = 0 : i64, scratch_operands = 2 : i64, tpu.core_type = #tpu.core_type<tc>, window_params = [{transform_indices = @transform_0, window_bounds = array<i64: 8, 8, 128>}, {pipeline_mode = #tpu.pipeline_mode<synchronous>, transform_indices = @transform_1, window_bounds = array<i64: 128, 128>}, {pipeline_mode = #tpu.pipeline_mode<synchronous>, transform_indices = @transform_2, window_bounds = array<i64: 1, 128>}, {pipeline_mode = #tpu.pipeline_mode<synchronous>, transform_indices = @transform_3, window_bounds = array<i64: 128, 128>}, {pipeline_mode = #tpu.pipeline_mode<synchronous>, transform_indices = @transform_4, window_bounds = array<i64: 128, 128>}, {pipeline_mode = #tpu.pipeline_mode<synchronous>, transform_indices = @transform_5, window_bounds = array<i64: 1, 128>}, {transform_indices = @transform_6, window_bounds = array<i64: 8, 8, 128>}]} {
    %c0_i32 = arith.constant 0 : i32
    %0 = arith.cmpi eq, %arg0, %c0_i32 : i32
    %1 = arith.extui %0 : i1 to i32
    %c0_i32_0 = arith.constant 0 : i32
    %2 = arith.cmpi ne, %1, %c0_i32_0 : i32
    scf.if %2 {
      %cst_82 = arith.constant 0.000000e+00 : f32
      %121 = vector.broadcast %cst_82 : f32 to vector<8x128xf32>
      %c0_83 = arith.constant 0 : index
      %c0_84 = arith.constant 0 : index
      %122 = vector.load %arg8[%c0_83, %c0_84] : memref<8x128xf32, #tpu.memory_space<vmem>>, vector<8x128xf32>
      tpu.vector_store %arg8[%c0_83, %c0_84], %121 {strides = array<i32>} : memref<8x128xf32, #tpu.memory_space<vmem>>, vector<8x128xf32>,
    } else {
    }
    %c0 = arith.constant 0 : index
    %c0_1 = arith.constant 0 : index
    %c0_2 = arith.constant 0 : index
    %3 = vector.load %arg1[%c0, %c0_1, %c0_2] : memref<8x8x128xf32, #tpu.memory_space<vmem>>, vector<8x8x128xf32>
    %4 = vector.shape_cast %3 : vector<8x8x128xf32> to vector<64x128xf32>
    %5 = arith.truncf %4 : vector<64x128xf32> to vector<64x128xbf16>
    %c0_3 = arith.constant 0 : index
    %c0_4 = arith.constant 0 : index
    %6 = vector.load %arg2[%c0_3, %c0_4] : memref<128x128xbf16, #tpu.memory_space<vmem>>, vector<128x128xbf16>
    %cst = arith.constant dense<0.000000e+00> : vector<64x128xf32>
    %7 = tpu.matmul %5, %6, %cst {dimension_numbers = #tpu.dot_dimension_numbers<[1], [0], [0], [1], [0, 0, 1, 1], [], []>} : vector<64x128xbf16>, vector<128x128xbf16>, vector<64x128xf32> -> vector<64x128xf32>
    %c0_5 = arith.constant 0 : index
    %c0_6 = arith.constant 0 : index
    %8 = vector.load %arg3[%c0_5, %c0_6] : memref<1x128xf32, #tpu.memory_space<vmem>>, vector<1x128xf32>
    %9 = vector.broadcast %8 : vector<1x128xf32> to vector<64x128xf32>
    %10 = arith.addf %7, %9 : vector<64x128xf32>
    %11 = vector.shape_cast %10 : vector<64x128xf32> to vector<8x8x128xf32>
    %c0_7 = arith.constant 0 : index
    %c0_8 = arith.constant 0 : index
    %c0_9 = arith.constant 0 : index
    %12 = vector.load %arg9[%c0_7, %c0_8, %c0_9] : memref<8x8x128xf32, #tpu.memory_space<vmem>>, vector<8x8x128xf32>
    tpu.vector_store %arg9[%c0_7, %c0_8, %c0_9], %11 {strides = array<i32>} : memref<8x8x128xf32, #tpu.memory_space<vmem>>, vector<8x8x128xf32>,
    %c0_10 = arith.constant 0 : index
    %c0_11 = arith.constant 0 : index
    %13 = vector.load %arg8[%c0_10, %c0_11] : memref<8x128xf32, #tpu.memory_space<vmem>>, vector<8x128xf32>
    %c0_i32_12 = arith.constant 0 : i32
    %14 = arith.index_cast %c0_i32_12 : i32 to index
    %c0_13 = arith.constant 0 : index
    %c0_14 = arith.constant 0 : index
    %15 = vector.load %arg9[%14, %c0_13, %c0_14] : memref<8x8x128xf32, #tpu.memory_space<vmem>>, vector<1x8x128xf32>
    %16 = vector.shape_cast %15 : vector<1x8x128xf32> to vector<8x128xf32>
    %17 = arith.truncf %13 : vector<8x128xf32> to vector<8x128xbf16>
    %c0_15 = arith.constant 0 : index
    %c0_16 = arith.constant 0 : index
    %18 = vector.load %arg4[%c0_15, %c0_16] : memref<128x128xbf16, #tpu.memory_space<vmem>>, vector<128x128xbf16>
    %cst_17 = arith.constant dense<0.000000e+00> : vector<8x128xf32>
    %19 = tpu.matmul %17, %18, %cst_17 {dimension_numbers = #tpu.dot_dimension_numbers<[1], [0], [0], [1], [0, 0, 1, 1], [], []>} : vector<8x128xbf16>, vector<128x128xbf16>, vector<8x128xf32> -> vector<8x128xf32>
    %20 = arith.addf %16, %19 : vector<8x128xf32>
    %21 = math.tanh %20 : vector<8x128xf32>
    %22 = arith.index_cast %c0_i32_12 : i32 to index
    %c0_18 = arith.constant 0 : index
    %c0_19 = arith.constant 0 : index
    %23 = vector.load %arg9[%22, %c0_18, %c0_19] : memref<8x8x128xf32, #tpu.memory_space<vmem>>, vector<1x8x128xf32>
    %24 = vector.shape_cast %23 : vector<1x8x128xf32> to vector<8x128xf32>
    %25 = vector.shape_cast %21 : vector<8x128xf32> to vector<1x8x128xf32>
    tpu.vector_store %arg9[%22, %c0_18, %c0_19], %25 {strides = array<i32>} : memref<8x8x128xf32, #tpu.memory_space<vmem>>, vector<1x8x128xf32>,
    %c1_i32 = arith.constant 1 : i32
    %26 = arith.index_cast %c1_i32 : i32 to index
    %c0_20 = arith.constant 0 : index
    %c0_21 = arith.constant 0 : index
    %27 = vector.load %arg9[%26, %c0_20, %c0_21] : memref<8x8x128xf32, #tpu.memory_space<vmem>>, vector<1x8x128xf32>
    %28 = vector.shape_cast %27 : vector<1x8x128xf32> to vector<8x128xf32>
    %29 = arith.truncf %21 : vector<8x128xf32> to vector<8x128xbf16>
    %c0_22 = arith.constant 0 : index
    %c0_23 = arith.constant 0 : index
    %30 = vector.load %arg4[%c0_22, %c0_23] : memref<128x128xbf16, #tpu.memory_space<vmem>>, vector<128x128xbf16>
    %cst_24 = arith.constant dense<0.000000e+00> : vector<8x128xf32>
    %31 = tpu.matmul %29, %30, %cst_24 {dimension_numbers = #tpu.dot_dimension_numbers<[1], [0], [0], [1], [0, 0, 1, 1], [], []>} : vector<8x128xbf16>, vector<128x128xbf16>, vector<8x128xf32> -> vector<8x128xf32>
    %32 = arith.addf %28, %31 : vector<8x128xf32>
    %33 = math.tanh %32 : vector<8x128xf32>
    %34 = arith.index_cast %c1_i32 : i32 to index
    %c0_25 = arith.constant 0 : index
    %c0_26 = arith.constant 0 : index
    %35 = vector.load %arg9[%34, %c0_25, %c0_26] : memref<8x8x128xf32, #tpu.memory_space<vmem>>, vector<1x8x128xf32>
    %36 = vector.shape_cast %35 : vector<1x8x128xf32> to vector<8x128xf32>
    %37 = vector.shape_cast %33 : vector<8x128xf32> to vector<1x8x128xf32>
    tpu.vector_store %arg9[%34, %c0_25, %c0_26], %37 {strides = array<i32>} : memref<8x8x128xf32, #tpu.memory_space<vmem>>, vector<1x8x128xf32>,
    %c2_i32 = arith.constant 2 : i32
    %38 = arith.index_cast %c2_i32 : i32 to index
    %c0_27 = arith.constant 0 : index
    %c0_28 = arith.constant 0 : index
    %39 = vector.load %arg9[%38, %c0_27, %c0_28] : memref<8x8x128xf32, #tpu.memory_space<vmem>>, vector<1x8x128xf32>
    %40 = vector.shape_cast %39 : vector<1x8x128xf32> to vector<8x128xf32>
    %41 = arith.truncf %33 : vector<8x128xf32> to vector<8x128xbf16>
    %c0_29 = arith.constant 0 : index
    %c0_30 = arith.constant 0 : index
    %42 = vector.load %arg4[%c0_29, %c0_30] : memref<128x128xbf16, #tpu.memory_space<vmem>>, vector<128x128xbf16>
    %cst_31 = arith.constant dense<0.000000e+00> : vector<8x128xf32>
    %43 = tpu.matmul %41, %42, %cst_31 {dimension_numbers = #tpu.dot_dimension_numbers<[1], [0], [0], [1], [0, 0, 1, 1], [], []>} : vector<8x128xbf16>, vector<128x128xbf16>, vector<8x128xf32> -> vector<8x128xf32>
    %44 = arith.addf %40, %43 : vector<8x128xf32>
    %45 = math.tanh %44 : vector<8x128xf32>
    %46 = arith.index_cast %c2_i32 : i32 to index
    %c0_32 = arith.constant 0 : index
    %c0_33 = arith.constant 0 : index
    %47 = vector.load %arg9[%46, %c0_32, %c0_33] : memref<8x8x128xf32, #tpu.memory_space<vmem>>, vector<1x8x128xf32>
    %48 = vector.shape_cast %47 : vector<1x8x128xf32> to vector<8x128xf32>
    %49 = vector.shape_cast %45 : vector<8x128xf32> to vector<1x8x128xf32>
    tpu.vector_store %arg9[%46, %c0_32, %c0_33], %49 {strides = array<i32>} : memref<8x8x128xf32, #tpu.memory_space<vmem>>, vector<1x8x128xf32>,
    %c3_i32 = arith.constant 3 : i32
    %50 = arith.index_cast %c3_i32 : i32 to index
    %c0_34 = arith.constant 0 : index
    %c0_35 = arith.constant 0 : index
    %51 = vector.load %arg9[%50, %c0_34, %c0_35] : memref<8x8x128xf32, #tpu.memory_space<vmem>>, vector<1x8x128xf32>
    %52 = vector.shape_cast %51 : vector<1x8x128xf32> to vector<8x128xf32>
    %53 = arith.truncf %45 : vector<8x128xf32> to vector<8x128xbf16>
    %c0_36 = arith.constant 0 : index
    %c0_37 = arith.constant 0 : index
    %54 = vector.load %arg4[%c0_36, %c0_37] : memref<128x128xbf16, #tpu.memory_space<vmem>>, vector<128x128xbf16>
    %cst_38 = arith.constant dense<0.000000e+00> : vector<8x128xf32>
    %55 = tpu.matmul %53, %54, %cst_38 {dimension_numbers = #tpu.dot_dimension_numbers<[1], [0], [0], [1], [0, 0, 1, 1], [], []>} : vector<8x128xbf16>, vector<128x128xbf16>, vector<8x128xf32> -> vector<8x128xf32>
    %56 = arith.addf %52, %55 : vector<8x128xf32>
    %57 = math.tanh %56 : vector<8x128xf32>
    %58 = arith.index_cast %c3_i32 : i32 to index
    %c0_39 = arith.constant 0 : index
    %c0_40 = arith.constant 0 : index
    %59 = vector.load %arg9[%58, %c0_39, %c0_40] : memref<8x8x128xf32, #tpu.memory_space<vmem>>, vector<1x8x128xf32>
    %60 = vector.shape_cast %59 : vector<1x8x128xf32> to vector<8x128xf32>
    %61 = vector.shape_cast %57 : vector<8x128xf32> to vector<1x8x128xf32>
    tpu.vector_store %arg9[%58, %c0_39, %c0_40], %61 {strides = array<i32>} : memref<8x8x128xf32, #tpu.memory_space<vmem>>, vector<1x8x128xf32>,
    %c4_i32 = arith.constant 4 : i32
    %62 = arith.index_cast %c4_i32 : i32 to index
    %c0_41 = arith.constant 0 : index
    %c0_42 = arith.constant 0 : index
    %63 = vector.load %arg9[%62, %c0_41, %c0_42] : memref<8x8x128xf32, #tpu.memory_space<vmem>>, vector<1x8x128xf32>
    %64 = vector.shape_cast %63 : vector<1x8x128xf32> to vector<8x128xf32>
    %65 = arith.truncf %57 : vector<8x128xf32> to vector<8x128xbf16>
    %c0_43 = arith.constant 0 : index
    %c0_44 = arith.constant 0 : index
    %66 = vector.load %arg4[%c0_43, %c0_44] : memref<128x128xbf16, #tpu.memory_space<vmem>>, vector<128x128xbf16>
    %cst_45 = arith.constant dense<0.000000e+00> : vector<8x128xf32>
    %67 = tpu.matmul %65, %66, %cst_45 {dimension_numbers = #tpu.dot_dimension_numbers<[1], [0], [0], [1], [0, 0, 1, 1], [], []>} : vector<8x128xbf16>, vector<128x128xbf16>, vector<8x128xf32> -> vector<8x128xf32>
    %68 = arith.addf %64, %67 : vector<8x128xf32>
    %69 = math.tanh %68 : vector<8x128xf32>
    %70 = arith.index_cast %c4_i32 : i32 to index
    %c0_46 = arith.constant 0 : index
    %c0_47 = arith.constant 0 : index
    %71 = vector.load %arg9[%70, %c0_46, %c0_47] : memref<8x8x128xf32, #tpu.memory_space<vmem>>, vector<1x8x128xf32>
    %72 = vector.shape_cast %71 : vector<1x8x128xf32> to vector<8x128xf32>
    %73 = vector.shape_cast %69 : vector<8x128xf32> to vector<1x8x128xf32>
    tpu.vector_store %arg9[%70, %c0_46, %c0_47], %73 {strides = array<i32>} : memref<8x8x128xf32, #tpu.memory_space<vmem>>, vector<1x8x128xf32>,
    %c5_i32 = arith.constant 5 : i32
    %74 = arith.index_cast %c5_i32 : i32 to index
    %c0_48 = arith.constant 0 : index
    %c0_49 = arith.constant 0 : index
    %75 = vector.load %arg9[%74, %c0_48, %c0_49] : memref<8x8x128xf32, #tpu.memory_space<vmem>>, vector<1x8x128xf32>
    %76 = vector.shape_cast %75 : vector<1x8x128xf32> to vector<8x128xf32>
    %77 = arith.truncf %69 : vector<8x128xf32> to vector<8x128xbf16>
    %c0_50 = arith.constant 0 : index
    %c0_51 = arith.constant 0 : index
    %78 = vector.load %arg4[%c0_50, %c0_51] : memref<128x128xbf16, #tpu.memory_space<vmem>>, vector<128x128xbf16>
    %cst_52 = arith.constant dense<0.000000e+00> : vector<8x128xf32>
    %79 = tpu.matmul %77, %78, %cst_52 {dimension_numbers = #tpu.dot_dimension_numbers<[1], [0], [0], [1], [0, 0, 1, 1], [], []>} : vector<8x128xbf16>, vector<128x128xbf16>, vector<8x128xf32> -> vector<8x128xf32>
    %80 = arith.addf %76, %79 : vector<8x128xf32>
    %81 = math.tanh %80 : vector<8x128xf32>
    %82 = arith.index_cast %c5_i32 : i32 to index
    %c0_53 = arith.constant 0 : index
    %c0_54 = arith.constant 0 : index
    %83 = vector.load %arg9[%82, %c0_53, %c0_54] : memref<8x8x128xf32, #tpu.memory_space<vmem>>, vector<1x8x128xf32>
    %84 = vector.shape_cast %83 : vector<1x8x128xf32> to vector<8x128xf32>
    %85 = vector.shape_cast %81 : vector<8x128xf32> to vector<1x8x128xf32>
    tpu.vector_store %arg9[%82, %c0_53, %c0_54], %85 {strides = array<i32>} : memref<8x8x128xf32, #tpu.memory_space<vmem>>, vector<1x8x128xf32>,
    %c6_i32 = arith.constant 6 : i32
    %86 = arith.index_cast %c6_i32 : i32 to index
    %c0_55 = arith.constant 0 : index
    %c0_56 = arith.constant 0 : index
    %87 = vector.load %arg9[%86, %c0_55, %c0_56] : memref<8x8x128xf32, #tpu.memory_space<vmem>>, vector<1x8x128xf32>
    %88 = vector.shape_cast %87 : vector<1x8x128xf32> to vector<8x128xf32>
    %89 = arith.truncf %81 : vector<8x128xf32> to vector<8x128xbf16>
    %c0_57 = arith.constant 0 : index
    %c0_58 = arith.constant 0 : index
    %90 = vector.load %arg4[%c0_57, %c0_58] : memref<128x128xbf16, #tpu.memory_space<vmem>>, vector<128x128xbf16>
    %cst_59 = arith.constant dense<0.000000e+00> : vector<8x128xf32>
    %91 = tpu.matmul %89, %90, %cst_59 {dimension_numbers = #tpu.dot_dimension_numbers<[1], [0], [0], [1], [0, 0, 1, 1], [], []>} : vector<8x128xbf16>, vector<128x128xbf16>, vector<8x128xf32> -> vector<8x128xf32>
    %92 = arith.addf %88, %91 : vector<8x128xf32>
    %93 = math.tanh %92 : vector<8x128xf32>
    %94 = arith.index_cast %c6_i32 : i32 to index
    %c0_60 = arith.constant 0 : index
    %c0_61 = arith.constant 0 : index
    %95 = vector.load %arg9[%94, %c0_60, %c0_61] : memref<8x8x128xf32, #tpu.memory_space<vmem>>, vector<1x8x128xf32>
    %96 = vector.shape_cast %95 : vector<1x8x128xf32> to vector<8x128xf32>
    %97 = vector.shape_cast %93 : vector<8x128xf32> to vector<1x8x128xf32>
    tpu.vector_store %arg9[%94, %c0_60, %c0_61], %97 {strides = array<i32>} : memref<8x8x128xf32, #tpu.memory_space<vmem>>, vector<1x8x128xf32>,
    %c7_i32 = arith.constant 7 : i32
    %98 = arith.index_cast %c7_i32 : i32 to index
    %c0_62 = arith.constant 0 : index
    %c0_63 = arith.constant 0 : index
    %99 = vector.load %arg9[%98, %c0_62, %c0_63] : memref<8x8x128xf32, #tpu.memory_space<vmem>>, vector<1x8x128xf32>
    %100 = vector.shape_cast %99 : vector<1x8x128xf32> to vector<8x128xf32>
    %101 = arith.truncf %93 : vector<8x128xf32> to vector<8x128xbf16>
    %c0_64 = arith.constant 0 : index
    %c0_65 = arith.constant 0 : index
    %102 = vector.load %arg4[%c0_64, %c0_65] : memref<128x128xbf16, #tpu.memory_space<vmem>>, vector<128x128xbf16>
    %cst_66 = arith.constant dense<0.000000e+00> : vector<8x128xf32>
    %103 = tpu.matmul %101, %102, %cst_66 {dimension_numbers = #tpu.dot_dimension_numbers<[1], [0], [0], [1], [0, 0, 1, 1], [], []>} : vector<8x128xbf16>, vector<128x128xbf16>, vector<8x128xf32> -> vector<8x128xf32>
    %104 = arith.addf %100, %103 : vector<8x128xf32>
    %105 = math.tanh %104 : vector<8x128xf32>
    %106 = arith.index_cast %c7_i32 : i32 to index
    %c0_67 = arith.constant 0 : index
    %c0_68 = arith.constant 0 : index
    %107 = vector.load %arg9[%106, %c0_67, %c0_68] : memref<8x8x128xf32, #tpu.memory_space<vmem>>, vector<1x8x128xf32>
    %108 = vector.shape_cast %107 : vector<1x8x128xf32> to vector<8x128xf32>
    %109 = vector.shape_cast %105 : vector<8x128xf32> to vector<1x8x128xf32>
    tpu.vector_store %arg9[%106, %c0_67, %c0_68], %109 {strides = array<i32>} : memref<8x8x128xf32, #tpu.memory_space<vmem>>, vector<1x8x128xf32>,
    %c8_i32 = arith.constant 8 : i32
    %c0_69 = arith.constant 0 : index
    %c0_70 = arith.constant 0 : index
    %110 = vector.load %arg8[%c0_69, %c0_70] : memref<8x128xf32, #tpu.memory_space<vmem>>, vector<8x128xf32>
    tpu.vector_store %arg8[%c0_69, %c0_70], %105 {strides = array<i32>} : memref<8x128xf32, #tpu.memory_space<vmem>>, vector<8x128xf32>,
    %c0_71 = arith.constant 0 : index
    %c0_72 = arith.constant 0 : index
    %c0_73 = arith.constant 0 : index
    %111 = vector.load %arg9[%c0_71, %c0_72, %c0_73] : memref<8x8x128xf32, #tpu.memory_space<vmem>>, vector<8x8x128xf32>
    %112 = vector.shape_cast %111 : vector<8x8x128xf32> to vector<64x128xf32>
    %113 = arith.truncf %112 : vector<64x128xf32> to vector<64x128xbf16>
    %c0_74 = arith.constant 0 : index
    %c0_75 = arith.constant 0 : index
    %114 = vector.load %arg5[%c0_74, %c0_75] : memref<128x128xbf16, #tpu.memory_space<vmem>>, vector<128x128xbf16>
    %cst_76 = arith.constant dense<0.000000e+00> : vector<64x128xf32>
    %115 = tpu.matmul %113, %114, %cst_76 {dimension_numbers = #tpu.dot_dimension_numbers<[1], [0], [0], [1], [0, 0, 1, 1], [], []>} : vector<64x128xbf16>, vector<128x128xbf16>, vector<64x128xf32> -> vector<64x128xf32>
    %c0_77 = arith.constant 0 : index
    %c0_78 = arith.constant 0 : index
    %116 = vector.load %arg6[%c0_77, %c0_78] : memref<1x128xf32, #tpu.memory_space<vmem>>, vector<1x128xf32>
    %117 = vector.broadcast %116 : vector<1x128xf32> to vector<64x128xf32>
    %118 = arith.addf %115, %117 : vector<64x128xf32>
    %119 = vector.shape_cast %118 : vector<64x128xf32> to vector<8x8x128xf32>
    %c0_79 = arith.constant 0 : index
    %c0_80 = arith.constant 0 : index
    %c0_81 = arith.constant 0 : index
    %120 = vector.load %arg7[%c0_79, %c0_80, %c0_81] : memref<8x8x128xf32, #tpu.memory_space<vmem>>, vector<8x8x128xf32>
    tpu.vector_store %arg7[%c0_79, %c0_80, %c0_81], %119 {strides = array<i32>} : memref<8x8x128xf32, #tpu.memory_space<vmem>>, vector<8x8x128xf32>,
    return
  }
  func.func @transform_0(%arg0: i32) -> (i32, i32, i32) {
    %c0_i32 = arith.constant 0 : i32
    %c0_i32_0 = arith.constant 0 : i32
    %c0_i32_1 = arith.constant 0 : i32
    return %arg0, %c0_i32, %c0_i32_0 : i32, i32, i32
  }
  func.func @transform_1(%arg0: i32) -> (i32, i32) {
    %c0_i32 = arith.constant 0 : i32
    %c0_i32_0 = arith.constant 0 : i32
    %c0_i32_1 = arith.constant 0 : i32
    return %c0_i32, %c0_i32_0 : i32, i32
  }
  func.func @transform_2(%arg0: i32) -> (i32, i32) {
    %c0_i32 = arith.constant 0 : i32
    %c0_i32_0 = arith.constant 0 : i32
    %c0_i32_1 = arith.constant 0 : i32
    return %c0_i32, %c0_i32_0 : i32, i32
  }
  func.func @transform_3(%arg0: i32) -> (i32, i32) {
    %c0_i32 = arith.constant 0 : i32
    %c0_i32_0 = arith.constant 0 : i32
    %c0_i32_1 = arith.constant 0 : i32
    return %c0_i32, %c0_i32_0 : i32, i32
  }
  func.func @transform_4(%arg0: i32) -> (i32, i32) {
    %c0_i32 = arith.constant 0 : i32
    %c0_i32_0 = arith.constant 0 : i32
    %c0_i32_1 = arith.constant 0 : i32
    return %c0_i32, %c0_i32_0 : i32, i32
  }
  func.func @transform_5(%arg0: i32) -> (i32, i32) {
    %c0_i32 = arith.constant 0 : i32
    %c0_i32_0 = arith.constant 0 : i32
    %c0_i32_1 = arith.constant 0 : i32
    return %c0_i32, %c0_i32_0 : i32, i32
  }
  func.func @transform_6(%arg0: i32) -> (i32, i32, i32) {
    %c0_i32 = arith.constant 0 : i32
    %c0_i32_0 = arith.constant 0 : i32
    %c0_i32_1 = arith.constant 0 : i32
    return %arg0, %c0_i32, %c0_i32_0 : i32, i32, i32
  }
}

</mosaic_0001>

<bundles_post_ra>
// kernel: tpu_custom_call.1
= control target key start
LH: loop header
LB: loop body
LE: loop exit
PB: predicated region body
PF: predicated region fallthrough
CT: control target
= control target key end

     0   :  { %11 = vsyncpa [#allocation5], 0  ;;  %s2177_s0 = inlined_call_operand.hbm [shape: f32[8,8,128], index: 0, kind: input, shape index: {}]   ;;  %s2178_s1 = inlined_call_operand.hbm [shape: bf16[128,128], index: 1, kind: input, shape index: {}]   ;;  %s2179_s2 = inlined_call_operand.vmem [shape: f32[1,128], index: 2, kind: input, shape index: {}]   ;;  %s2180_s3 = inlined_call_operand.hbm [shape: bf16[128,128], index: 3, kind: input, shape index: {}]   ;;  %s2181_s4 = inlined_call_operand.hbm [shape: bf16[128,128], index: 4, kind: input, shape index: {}]   ;;  %s2182_s5 = inlined_call_operand.vmem [shape: f32[1,128], index: 5, kind: input, shape index: {}]   ;;  %s2183_s6 = inlined_call_operand.hbm [shape: f32[8,8,128], index: 6, kind: output, shape index: {}]  }
   0x1   :  { %12 = vsyncpa [#allocation8], 0 }
   0x2   :  { %13 = vsyncpa [#allocation11], 0 }
   0x3   :  { %14 = vsyncpa [#allocation6], 0  ;;  %s1909_s21 = smov [#allocation7]   ;;  %s1791_s25 = scalar_lea.hbm %s2178_s1, 1024 }
   0x4   :  { %s32_s22 = sshll.u32 %s1909_s21, 4  ;;  %p1792_p0 = scmp.ne.s32.totalorder %s2178_s1, %s1791_s25  ;;  %s33_s22 = int_to_ptr.vmem [resolvable:$true] %s32_s22 }
   0x5   :  { %p1795_p1 = scmp.lt.u32.totalorder %s1791_s25, %s2178_s1 }
   0x7   :  { %p1797_p2 = pnand %p1795_p1, %p1792_p0 }
   0x9   :  { %1800 = shalt.err (!%p1797_p2)
}
   0xa   :  { %s1801_s30 = scalar_lea.vmem %s33_s22, 1024  ;;  %p1806_p4 = scmp.lt.s32.totalorder %s33_s22, %s33_s22 }
   0xb   :  { %p1802_p3 = scmp.ne.s32.totalorder %s33_s22, %s1801_s30  ;;  %p1807_p5 = scmp.lt.s32.totalorder %s1801_s30, %s1801_s30 }
   0xd   :  { %p1808_p6 = por %p1807_p5, %p1806_p4 }
   0xf   :  { %p1809_p7 = pnand %p1808_p6, %p1802_p3 }
  0x11   :  { %1812 = shalt.err (!%p1809_p7)
}
  0x12   :  { %s1910_s7 = smov 64   ;;  %s1911_s8 = smov 4  }
  0x13   :  { %38 = dma.hbm_to_vmem [thread:$0]  %s2178_s1, 1024, %s33_s22, [#allocation8], %s1910_s7, %s1910_s7, %s1911_s8  }
  0x14   :  { %s1912_s11 = smov [#allocation4]   ;;  %s1813_s15 = scalar_lea.hbm %s2177_s0, 1024 }
  0x15   :  { %s20_s12 = sshll.u32 %s1912_s11, 4  ;;  %p1814_p8 = scmp.ne.s32.totalorder %s2177_s0, %s1813_s15  ;;  %s21_s12 = int_to_ptr.vmem [resolvable:$true] %s20_s12 }
  0x16   :  { %p1817_p9 = scmp.lt.u32.totalorder %s1813_s15, %s2177_s0 }
  0x18   :  { %p1819_p10 = pnand %p1817_p9, %p1814_p8 }
  0x1a   :  { %1822 = shalt.err (!%p1819_p10)
}
  0x1b   :  { %s1823_s20 = scalar_lea.vmem %s21_s12, 1024  ;;  %p1828_p12 = scmp.lt.s32.totalorder %s21_s12, %s21_s12 }
  0x1c   :  { %p1824_p11 = scmp.ne.s32.totalorder %s21_s12, %s1823_s20  ;;  %p1829_p13 = scmp.lt.s32.totalorder %s1823_s20, %s1823_s20 }
  0x1e   :  { %p1830_p0 = por %p1829_p13, %p1828_p12 }
  0x20   :  { %p1831_p1 = pnand %p1830_p0, %p1824_p11 }
  0x22   :  { %1834 = shalt.err (!%p1831_p1)
}
  0x23   :  { %s1913_s1 = smov 128   ;;  %s1914_s21 = smov 8  }
  0x24   :  { %26 = dma.hbm_to_vmem [thread:$0]  %s2177_s0, 1024, %s21_s12, [#allocation5], %s1913_s1, %s1913_s1, %s1914_s21  }
  0x25   :  { %s1915_s24 = smov [#allocation9]   ;;  %s1916_s26 = smov [#allocation10]  }
  0x26   :  { %s46_s25 = sshll.u32 %s1915_s24, 4  ;;  %s58_s27 = sshll.u32 %s1916_s26, 4  ;;  %s47_s25 = int_to_ptr.vmem [resolvable:$true] %s46_s25  ;;  %s1986_s27 = int_to_ptr.vmem [resolvable:$true] %s58_s27 }
  0x27   :  { %s1835_s30 = scalar_lea.hbm %s2180_s3, 1024 }
  0x28   :  { %p1836_p2 = scmp.ne.s32.totalorder %s2180_s3, %s1835_s30  ;;  %p1839_p3 = scmp.lt.u32.totalorder %s1835_s30, %s2180_s3 }
  0x2a   :  { %p1841_p4 = pnand %p1839_p3, %p1836_p2 }
  0x2c   :  { %1844 = shalt.err (!%p1841_p4)
}
  0x2d   :  { %s1845_s0 = scalar_lea.vmem %s47_s25, 1024  ;;  %p1850_p6 = scmp.lt.s32.totalorder %s47_s25, %s47_s25 }
  0x2e   :  { %p1846_p5 = scmp.ne.s32.totalorder %s47_s25, %s1845_s0  ;;  %p1851_p7 = scmp.lt.s32.totalorder %s1845_s0, %s1845_s0 }
  0x30   :  { %p1852_p8 = por %p1851_p7, %p1850_p6 }
  0x32   :  { %p1853_p9 = pnand %p1852_p8, %p1846_p5 }
  0x34   :  { %1856 = shalt.err (!%p1853_p9)
}
  0x35   :  { %52 = dma.hbm_to_vmem [thread:$0]  %s2180_s3, 1024, %s47_s25, [#allocation8], %s1910_s7, %s1910_s7, %s1911_s8  }
  0x36   :  { %s1857_s17 = scalar_lea.hbm %s2181_s4, 1024 }
  0x37   :  { %p1858_p10 = scmp.ne.s32.totalorder %s2181_s4, %s1857_s17  ;;  %p1861_p11 = scmp.lt.u32.totalorder %s1857_s17, %s2181_s4 }
  0x39   :  { %p1863_p12 = pnand %p1861_p11, %p1858_p10 }
  0x3b   :  { %1866 = shalt.err (!%p1863_p12)
}
  0x3c   :  { %s1867_s23 = scalar_lea.vmem %s1986_s27, 1024  ;;  %p1872_p0 = scmp.lt.s32.totalorder %s1986_s27, %s1986_s27 }
  0x3d   :  { %p1868_p13 = scmp.ne.s32.totalorder %s1986_s27, %s1867_s23  ;;  %p1873_p1 = scmp.lt.s32.totalorder %s1867_s23, %s1867_s23 }
  0x3f   :  { %p1874_p2 = por %p1873_p1, %p1872_p0 }
  0x41   :  { %p1875_p3 = pnand %p1874_p2, %p1868_p13 }
  0x43   :  { %1878 = shalt.err (!%p1875_p3)
}
  0x44   :  { %64 = dma.hbm_to_vmem [thread:$0]  %s2181_s4, 1024, %s1986_s27, [#allocation11], %s1910_s7, %s1910_s7, %s1911_s8  }
  0x45   :  { %1901 = dma.done.wait [#allocation5], 1024  }
  0x46   :  { %1902 = vsyncadd [#allocation5], 4294966272 }
  0x47   :  { %1903 = dma.done.wait [#allocation8], 2048  }
  0x48   :  { %1904 = vsyncadd [#allocation8], 4294965248 }
  0x49   :  { %1905 = dma.done.wait [#allocation11], 1024  }
  0x4a   :  { %1906 = vsyncadd [#allocation11], 4294966272  ;;  %v1917_v0 = vmov 0.0   ;;  %vm1918_vm0 = vmmov 0   ;;  %v1695_v1 = vld [vmem:[#allocation7] sm:$0xff]   ;;  %v1697_v3 = vld [vmem:[#allocation7 + $0x8] sm:$0xff]  }
  0x4b   :  { %1499 = vmatprep.subr.bf16.mxu1 %v1917_v0  ;;  %1515 = vmatprep.mubr.msk.bf16.mxu1 %vm1918_vm0, %v1917_v0  ;;  %v1696_v2 = vld [vmem:[#allocation9] sm:$0xff]   ;;  %v1698_v4 = vld [vmem:[#allocation9 + $0x8] sm:$0xff]   ;;  %v1699_v5 = vld [vmem:[#allocation7 + $0x10] sm:$0xff]   ;;  %v1919_v25 = vmov 0.0|0.0  }
  0x4c   :  { %1475 = vmatprep.subr.bf16.mxu0 %v1695_v1  ;;  %1500 = vmatpush3.bf16.msra.mxu1 %v1696_v2  ;;  %v1700_v6 = vld [vmem:[#allocation9 + $0x10] sm:$0xff]   ;;  %v1701_v7 = vld [vmem:[#allocation7 + $0x18] sm:$0xff]   ;;  %v1703_v9 = vld [vmem:[#allocation7 + $0x20] sm:$0xff]  }
  0x4d   :  { %1476 = vmatpush3.bf16.msra.mxu0 %v1695_v1  ;;  %1501 = vmatprep.subr.bf16.mxu1 %v1917_v0  ;;  %v1702_v8 = vld [vmem:[#allocation9 + $0x18] sm:$0xff]   ;;  %v1704_v10 = vld [vmem:[#allocation9 + $0x20] sm:$0xff]   ;;  %v1705_v11 = vld [vmem:[#allocation7 + $0x28] sm:$0xff]  }
  0x4e   :  { %1477 = vmatprep.subr.bf16.mxu0 %v1697_v3  ;;  %v85_v12 = vld [vmem:[#allocation4] sm:$0xff]  ;;  %v86_v13 = vld [vmem:[#allocation4 + $0x8] sm:$0xff]  ;;  %v1707_v16 = vld [vmem:[#allocation7 + $0x30] sm:$0xff]  }
  0x4f   :  { %v93_v14 = vpack.c.bf16 %v86_v13, %v85_v12  ;;  %v1706_v15 = vld [vmem:[#allocation9 + $0x28] sm:$0xff]   ;;  %v1708_v17 = vld [vmem:[#allocation9 + $0x30] sm:$0xff]   ;;  %v1709_v18 = vld [vmem:[#allocation7 + $0x38] sm:$0xff]  }
  0x50   :  { %1502 = vmatpush3.bf16.msra.mxu1 %v1698_v4  ;;  %v1710_v19 = vld [vmem:[#allocation9 + $0x38] sm:$0xff]   ;;  %v87_v20 = vld [vmem:[#allocation4 + $0x10] sm:$0xff]  ;;  %v1711_v22 = vld [vmem:[#allocation9] sm:$0xff]  }
  0x51   :  { %1478 = vmatpush3.bf16.msra.mxu0 %v1697_v3  ;;  %1503 = vmatprep.subr.bf16.mxu1 %v1917_v0  ;;  %v88_v21 = vld [vmem:[#allocation4 + $0x18] sm:$0xff]  ;;  %v1712_v24 = vld [vmem:[#allocation9 + $0x8] sm:$0xff]   ;;  %v1713_v26 = vld [vmem:[#allocation9 + $0x10] sm:$0xff]  }
  0x52   :  { %1479 = vmatprep.subr.bf16.mxu0 %v1699_v5  ;;  %1491 = vmatprep.mubr.bf16.mxu0 %v93_v14  ;;  %v94_v23 = vpack.c.bf16 %v88_v21, %v87_v20  ;;  %v1714_v27 = vld [vmem:[#allocation9 + $0x18] sm:$0xff]   ;;  %v1715_v28 = vld [vmem:[#allocation9 + $0x20] sm:$0xff]   ;;  %v90_v30 = vld [vmem:[#allocation4 + $0x28] sm:$0xff] }
  0x53   :  { %v89_v29 = vld [vmem:[#allocation4 + $0x20] sm:$0xff]  ;;  %v91_v32 = vld [vmem:[#allocation4 + $0x30] sm:$0xff]  ;;  %v92_v33 = vld [vmem:[#allocation4 + $0x38] sm:$0xff] }
  0x54   :  { %1504 = vmatpush3.bf16.msra.mxu1 %v1700_v6  ;;  %v95_v31 = vpack.c.bf16 %v90_v30, %v89_v29  ;;  %v96_v34 = vpack.c.bf16 %v92_v33, %v91_v32  ;;  %v1716_v35 = vld [vmem:[#allocation9 + $0x28] sm:$0xff]   ;;  %v1717_v36 = vld [vmem:[#allocation9 + $0x30] sm:$0xff]   ;;  %v1718_v37 = vld [vmem:[#allocation9 + $0x38] sm:$0xff]  }
  0x55   :  { %1480 = vmatpush3.bf16.msra.mxu0 %v1699_v5  ;;  %1505 = vmatprep.subr.bf16.mxu1 %v1917_v0  ;;  %v1719_v38 = vld [vmem:[#allocation9] sm:$0xff]   ;;  %v1720_v39 = vld [vmem:[#allocation9 + $0x8] sm:$0xff]   ;;  %v1721_v40 = vld [vmem:[#allocation9 + $0x10] sm:$0xff]  }
  0x56   :  { %1481 = vmatprep.subr.bf16.mxu0 %v1701_v7  ;;  %v1722_v41 = vld [vmem:[#allocation9 + $0x18] sm:$0xff]   ;;  %v2054_v42 = vld [vmem:[%s2179_s2] ss:$0 sm:$0xff]  ;;  %v1724_v60 = vld [vmem:[#allocation9 + $0x28] sm:$0xff]  }
  0x57   :  { %v1723_v59 = vld [vmem:[#allocation9 + $0x20] sm:$0xff]   ;;  %v1725_v61 = vld [vmem:[#allocation9 + $0x30] sm:$0xff]   ;;  %v1726_v62 = vld [vmem:[#allocation9 + $0x38] sm:$0xff]  }
  0x58   :  { %1506 = vmatpush3.bf16.msra.mxu1 %v1702_v8  ;;  %v1727_v63 = vld [vmem:[#allocation9] sm:$0xff]   ;;  %v1728_v1 = vld [vmem:[#allocation9 + $0x8] sm:$0xff]   ;;  %v1729_v2 = vld [vmem:[#allocation9 + $0x10] sm:$0xff]  }
  0x59   :  { %1482 = vmatpush3.bf16.msra.mxu0 %v1701_v7  ;;  %1507 = vmatprep.subr.bf16.mxu1 %v1917_v0  ;;  %v1730_v3 = vld [vmem:[#allocation9 + $0x18] sm:$0xff]   ;;  %v1731_v12 = vld [vmem:[#allocation9 + $0x20] sm:$0xff]   ;;  %v1732_v13 = vld [vmem:[#allocation9 + $0x28] sm:$0xff]  }
  0x5a   :  { %1483 = vmatprep.subr.bf16.mxu0 %v1703_v9  ;;  %v1733_v14 = vld [vmem:[#allocation9 + $0x30] sm:$0xff]   ;;  %v1740_v29 = vld [vmem:[#allocation9 + $0x28] sm:$0xff]   ;;  %v1743_v32 = vld [vmem:[#allocation9] sm:$0xff]  }
  0x5b   :  { %v1741_v30 = vld [vmem:[#allocation9 + $0x30] sm:$0xff]   ;;  %v1744_v33 = vld [vmem:[#allocation9 + $0x8] sm:$0xff]  }
  0x5c   :  { %1508 = vmatpush3.bf16.msra.mxu1 %v1704_v10 }
  0x5d   :  { %1484 = vmatpush3.bf16.msra.mxu0 %v1703_v9  ;;  %1509 = vmatprep.subr.bf16.mxu1 %v1917_v0 }
  0x5e   :  { %1485 = vmatprep.subr.bf16.mxu0 %v1705_v11 }
  0x60   :  { %1510 = vmatpush3.bf16.msra.mxu1 %v1706_v15  ;;  %v1734_v15 = vld [vmem:[#allocation9 + $0x38] sm:$0xff]  }
  0x61   :  { %1486 = vmatpush3.bf16.msra.mxu0 %v1705_v11  ;;  %1511 = vmatprep.subr.bf16.mxu1 %v1917_v0 }
  0x62   :  { %1487 = vmatprep.subr.bf16.mxu0 %v1707_v16 }
  0x64   :  { %1512 = vmatpush3.bf16.msra.mxu1 %v1708_v17  ;;  %v1736_v17 = vld [vmem:[#allocation9 + $0x8] sm:$0xff]  }
  0x65   :  { %1488 = vmatpush3.bf16.msra.mxu0 %v1707_v16  ;;  %1513 = vmatprep.subr.bf16.mxu1 %v1917_v0  ;;  %v1735_v16 = vld [vmem:[#allocation9] sm:$0xff]  }
  0x66   :  { %1489 = vmatprep.subr.bf16.mxu0 %v1709_v18 }
  0x68   :  { %1514 = vmatpush3.bf16.msra.mxu1 %v1710_v19  ;;  %v1738_v19 = vld [vmem:[#allocation9 + $0x18] sm:$0xff]  }
  0x69   :  { %1490 = vmatpush3.bf16.msra.mxu0 %v1709_v18  ;;  %1539 = vmatprep.subr.bf16.mxu1 %v1917_v0  ;;  %v1737_v18 = vld [vmem:[#allocation9 + $0x10] sm:$0xff]  }
  0x6a   :  { %1519 = vmatprep.subr.bf16.mxu0 %v1917_v0 }
  0x6b   :  { %1516 = vmatmul.mubr.bf16.vlgmr.msra.gmra.mrb[0].mxu1 %v1919_v25 }
  0x6c   :  { %1492 = vmatmul.mubr.bf16.vlgmr.msra.gmra.mrb[0].mxu0 %v94_v23  ;;  %1555 = vmatprep.mubr.msk.bf16.mxu1 %vm1918_vm0, %v1917_v0 }
  0x6d   :  { %1520 = vmatpush3.bf16.msra.mxu0 %v1711_v22  ;;  %1495 = vmatprep.mubr.bf16.mxu0 %v95_v31  ;;  %v1742_v31 = vld [vmem:[#allocation9 + $0x38] sm:$0xff]  }
  0x6e   :  { %1521 = vmatprep.subr.bf16.mxu0 %v1917_v0  ;;  %1540 = vmatpush3.bf16.msra.mxu1 %v1719_v38 }
  0x6f   :  { %1541 = vmatprep.subr.bf16.mxu1 %v1917_v0 }
  0x71   :  { %1522 = vmatpush3.bf16.msra.mxu0 %v1712_v24 }
  0x72   :  { %1523 = vmatprep.subr.bf16.mxu0 %v1917_v0  ;;  %1542 = vmatpush3.bf16.msra.mxu1 %v1720_v39 }
  0x73   :  { %1543 = vmatprep.subr.bf16.mxu1 %v1917_v0 }
  0x74   :  { %1496 = vmatmul.mubr.bf16.gmra.mrb[4].mxu0 %v96_v34  ;;  %v1745_v34 = vld [vmem:[#allocation9 + $0x10] sm:$0xff]  }
  0x75   :  { %1524 = vmatpush3.bf16.msra.mxu0 %v1713_v26  ;;  %1535 = vmatprep.mubr.msk.bf16.mxu0 %vm1918_vm0, %v1917_v0 }
  0x76   :  { %1525 = vmatprep.subr.bf16.mxu0 %v1917_v0  ;;  %1544 = vmatpush3.bf16.msra.mxu1 %v1721_v40 }
  0x77   :  { %1545 = vmatprep.subr.bf16.mxu1 %v1917_v0 }
  0x79   :  { %1526 = vmatpush3.bf16.msra.mxu0 %v1714_v27 }
  0x7a   :  { %1527 = vmatprep.subr.bf16.mxu0 %v1917_v0  ;;  %1546 = vmatpush3.bf16.msra.mxu1 %v1722_v41 }
  0x7b   :  { %1547 = vmatprep.subr.bf16.mxu1 %v1917_v0 }
  0x7d   :  { %1528 = vmatpush3.bf16.msra.mxu0 %v1715_v28  ;;  %v1739_v28 = vld [vmem:[#allocation9 + $0x20] sm:$0xff]  }
  0x7e   :  { %1529 = vmatprep.subr.bf16.mxu0 %v1917_v0  ;;  %1548 = vmatpush3.bf16.msra.mxu1 %v1723_v59 }
  0x7f   :  { %1549 = vmatprep.subr.bf16.mxu1 %v1917_v0 }
  0x81   :  { %1530 = vmatpush3.bf16.msra.mxu0 %v1716_v35  ;;  %v1746_v35 = vld [vmem:[#allocation9 + $0x18] sm:$0xff]  }
  0x82   :  { %1531 = vmatprep.subr.bf16.mxu0 %v1917_v0  ;;  %1550 = vmatpush3.bf16.msra.mxu1 %v1724_v60 }
  0x83   :  { %1551 = vmatprep.subr.bf16.mxu1 %v1917_v0 }
  0x85   :  { %1532 = vmatpush3.bf16.msra.mxu0 %v1717_v36 }
  0x86   :  { %1533 = vmatprep.subr.bf16.mxu0 %v1917_v0  ;;  %1552 = vmatpush3.bf16.msra.mxu1 %v1725_v61 }
  0x87   :  { %1553 = vmatprep.subr.bf16.mxu1 %v1917_v0 }
  0x89   :  { %1534 = vmatpush3.bf16.msra.mxu0 %v1718_v37 }
  0x8a   :  { %1559 = vmatprep.subr.bf16.mxu0 %v1917_v0  ;;  %1554 = vmatpush3.bf16.msra.mxu1 %v1726_v62 }
  0x8b   :  { %1579 = vmatprep.subr.bf16.mxu1 %v1917_v0 }
 0x13e   :  { %v342_v44 = vpop.f32.mrb[0].mxu1 }
 0x13f   :  { %v2056_v43 = vpop.f32.mrb[0].mxu0  ;;  %v1517_v46 = vpop.f32.mrb[1].mxu1 }
 0x140   :  { %v202_v45 = vpop.f32.mrb[1].mxu0  ;;  %v345_v49 = vpop.f32.mrb[2].mxu1  ;;  %v211_v20 = vadd.f32 %v2056_v43, %v2054_v42  ;;  %v1748_v46 = vld [vmem:[#allocation9 + $0x28] sm:$0xff]  }
 0x141   :  { %v203_v47 = vadd.f32 %v2054_v42, %v202_v45  ;;  %v2059_v48 = vpop.f32.mrb[2].mxu0  ;;  %v1518_v51 = vpop.f32.mrb[3].mxu1  ;;  %v1747_v45 = vld [vmem:[#allocation9 + $0x20] sm:$0xff]  }
 0x142   :  { %v205_v50 = vpop.f32.mrb[3].mxu0  ;;  %v214_v36 = vadd.f32 %v2059_v48, %v2054_v42  ;;  %v1750_v48 = vld [vmem:[#allocation9 + $0x38] sm:$0xff]   ;;  %v1751_v49 = vld [vmem:[#allocation9] sm:$0xff]   ;;  %v1753_v51 = vld [vmem:[#allocation9 + $0x10] sm:$0xff]  }
 0x143   :  { %v348_v52 = vadd.f32 %v342_v44, %v203_v47  ;;  %v206_v4 = vadd.f32 %v2054_v42, %v205_v50  ;;  %v1749_v47 = vld [vmem:[#allocation9 + $0x30] sm:$0xff]   ;;  %v1752_v50 = vld [vmem:[#allocation9 + $0x8] sm:$0xff]  }
 0x145   :  { %1775 = vtanh.f32 %v348_v52  ;;  %v1754_v52 = vld [vmem:[#allocation9 + $0x18] sm:$0xff]  }
 0x147   :  { %v2067_v55 = vpop.f32.mrb[4].mxu0 }
 0x148   :  { %v2069_v56 = vpop.f32.mrb[5].mxu0 }
 0x149   :  { %v2071_v57 = vpop.f32.mrb[6].mxu0 }
 0x14a   :  { %v2073_v58 = vpop.f32.mrb[7].mxu0 }
 0x14f   :  { %v2061_v53 = vpop.eup %1775 }
 0x150   :  { %v353_v54 = vpack.c.bf16 %v2061_v53, %v2061_v53 }
 0x152   :  { %1536 = vmatmul.mubr.bf16.vlgmr.msra.gmra.mrb[8].mxu0 %v353_v54  ;;  %v219_v54 = vadd.f32 %v2054_v42, %v2069_v56  ;;  %v1756_v56 = vld [vmem:[#allocation9 + $0x28] sm:$0xff]  }
 0x153   :  { %1575 = vmatprep.mubr.msk.bf16.mxu0 %vm1918_vm0, %v1917_v0  ;;  %1560 = vmatpush3.bf16.msra.mxu0 %v1727_v63 }
 0x154   :  { %1561 = vmatprep.subr.bf16.mxu0 %v1917_v0 }
 0x157   :  { %1562 = vmatpush3.bf16.msra.mxu0 %v1728_v1 }
 0x158   :  { %1563 = vmatprep.subr.bf16.mxu0 %v1917_v0 }
 0x15b   :  { %1564 = vmatpush3.bf16.msra.mxu0 %v1729_v2 }
 0x15c   :  { %1565 = vmatprep.subr.bf16.mxu0 %v1917_v0 }
 0x15f   :  { %1566 = vmatpush3.bf16.msra.mxu0 %v1730_v3  ;;  %v1755_v3 = vld [vmem:[#allocation9 + $0x20] sm:$0xff]  }
 0x160   :  { %1567 = vmatprep.subr.bf16.mxu0 %v1917_v0 }
 0x163   :  { %1568 = vmatpush3.bf16.msra.mxu0 %v1731_v12  ;;  %v222_v12 = vadd.f32 %v2054_v42, %v2073_v58  ;;  %v1762_v58 = vld [vmem:[#allocation10 + $0x18] sm:$0xff]  }
 0x164   :  { %1569 = vmatprep.subr.bf16.mxu0 %v1917_v0 }
 0x167   :  { %1570 = vmatpush3.bf16.msra.mxu0 %v1732_v13 }
 0x168   :  { %1571 = vmatprep.subr.bf16.mxu0 %v1917_v0 }
 0x16b   :  { %1572 = vmatpush3.bf16.msra.mxu0 %v1733_v14 }
 0x16c   :  { %1573 = vmatprep.subr.bf16.mxu0 %v1917_v0 }
 0x16f   :  { %1574 = vmatpush3.bf16.msra.mxu0 %v1734_v15 }
 0x170   :  { %1599 = vmatprep.subr.bf16.mxu0 %v1917_v0 }
 0x225   :  { %v452_v5 = vpop.f32.mrb[8].mxu0 }
 0x226   :  { %v458_v6 = vadd.f32 %v452_v5, %v206_v4  ;;  %v1537_v7 = vpop.f32.mrb[9].mxu0  ;;  %v1757_v4 = vld [vmem:[#allocation9 + $0x30] sm:$0xff]   ;;  %v1758_v5 = vld [vmem:[#allocation9 + $0x38] sm:$0xff]  }
 0x227   :  { %v455_v8 = vpop.f32.mrb[10].mxu0  ;;  %v1767_v7 = vld [vmem:[#allocation9] sm:$0xff]  }
 0x228   :  { %1777 = vtanh.f32 %v458_v6  ;;  %v1538_v9 = vpop.f32.mrb[11].mxu0  ;;  %v1759_v6 = vld [vmem:[#allocation10] sm:$0xff]   ;;  %v1768_v8 = vld [vmem:[#allocation9 + $0x8] sm:$0xff]  }
 0x229   :  { %v1769_v9 = vld [vmem:[#allocation9 + $0x10] sm:$0xff]  }
 0x232   :  { %v2084_v10 = vpop.eup %1777 }
 0x233   :  { %v463_v11 = vpack.c.bf16 %v2084_v10, %v2084_v10 }
 0x235   :  { %1556 = vmatmul.mubr.bf16.vlgmr.msra.gmra.mrb[4].mxu1 %v463_v11  ;;  %v1770_v11 = vld [vmem:[#allocation9 + $0x18] sm:$0xff]  }
 0x236   :  { %1595 = vmatprep.mubr.msk.bf16.mxu1 %vm1918_vm0, %v1917_v0  ;;  %1580 = vmatpush3.bf16.msra.mxu1 %v1735_v16 }
 0x237   :  { %1581 = vmatprep.subr.bf16.mxu1 %v1917_v0 }
 0x23a   :  { %1582 = vmatpush3.bf16.msra.mxu1 %v1736_v17 }
 0x23b   :  { %1583 = vmatprep.subr.bf16.mxu1 %v1917_v0 }
 0x23e   :  { %1584 = vmatpush3.bf16.msra.mxu1 %v1737_v18 }
 0x23f   :  { %1585 = vmatprep.subr.bf16.mxu1 %v1917_v0 }
 0x242   :  { %1586 = vmatpush3.bf16.msra.mxu1 %v1738_v19 }
 0x243   :  { %1587 = vmatprep.subr.bf16.mxu1 %v1917_v0 }
 0x246   :  { %1588 = vmatpush3.bf16.msra.mxu1 %v1739_v28  ;;  %v1771_v28 = vld [vmem:[#allocation9 + $0x20] sm:$0xff]  }
 0x247   :  { %1589 = vmatprep.subr.bf16.mxu1 %v1917_v0 }
 0x24a   :  { %1590 = vmatpush3.bf16.msra.mxu1 %v1740_v29  ;;  %v1772_v29 = vld [vmem:[#allocation9 + $0x28] sm:$0xff]  }
 0x24b   :  { %1591 = vmatprep.subr.bf16.mxu1 %v1917_v0 }
 0x24e   :  { %1592 = vmatpush3.bf16.msra.mxu1 %v1741_v30  ;;  %v1773_v30 = vld [vmem:[#allocation9 + $0x30] sm:$0xff]  }
 0x24f   :  { %1593 = vmatprep.subr.bf16.mxu1 %v1917_v0 }
 0x252   :  { %1594 = vmatpush3.bf16.msra.mxu1 %v1742_v31  ;;  %v1774_v31 = vld [vmem:[#allocation9 + $0x38] sm:$0xff]  }
 0x253   :  { %1619 = vmatprep.subr.bf16.mxu1 %v1917_v0 }
 0x308   :  { %v562_v21 = vpop.f32.mrb[4].mxu1 }
 0x309   :  { %v568_v22 = vadd.f32 %v562_v21, %v211_v20  ;;  %v1557_v23 = vpop.f32.mrb[5].mxu1  ;;  %v1760_v20 = vld [vmem:[#allocation10 + $0x8] sm:$0xff]   ;;  %v1130_v21 = vpack.c.bf16 %v2084_v10, %v2061_v53  ;;  %v1766_v53 = vld [vmem:[#allocation10 + $0x38] sm:$0xff]  }
 0x30a   :  { %v565_v24 = vpop.f32.mrb[6].mxu1  ;;  %v1763_v23 = vld [vmem:[#allocation10 + $0x20] sm:$0xff]  }
 0x30b   :  { %1779 = vtanh.f32 %v568_v22  ;;  %v1558_v25 = vpop.f32.mrb[7].mxu1  ;;  %v1761_v22 = vld [vmem:[#allocation10 + $0x10] sm:$0xff]   ;;  %v1764_v24 = vld [vmem:[#allocation10 + $0x28] sm:$0xff]  }
 0x30c   :  { %v1765_v25 = vld [vmem:[#allocation10 + $0x30] sm:$0xff]  }
 0x315   :  { %v2100_v26 = vpop.eup %1779 }
 0x316   :  { %v573_v27 = vpack.c.bf16 %v2100_v26, %v2100_v26 }
 0x318   :  { %1576 = vmatmul.mubr.bf16.vlgmr.msra.gmra.mrb[12].mxu0 %v573_v27 }
 0x319   :  { %1615 = vmatprep.mubr.msk.bf16.mxu0 %vm1918_vm0, %v1917_v0  ;;  %1600 = vmatpush3.bf16.msra.mxu0 %v1743_v32 }
 0x31a   :  { %1601 = vmatprep.subr.bf16.mxu0 %v1917_v0 }
 0x31d   :  { %1602 = vmatpush3.bf16.msra.mxu0 %v1744_v33 }
 0x31e   :  { %1603 = vmatprep.subr.bf16.mxu0 %v1917_v0 }
 0x321   :  { %1604 = vmatpush3.bf16.msra.mxu0 %v1745_v34 }
 0x322   :  { %1605 = vmatprep.subr.bf16.mxu0 %v1917_v0 }
 0x325   :  { %1606 = vmatpush3.bf16.msra.mxu0 %v1746_v35 }
 0x326   :  { %1607 = vmatprep.subr.bf16.mxu0 %v1917_v0 }
 0x329   :  { %1608 = vmatpush3.bf16.msra.mxu0 %v1747_v45 }
 0x32a   :  { %1609 = vmatprep.subr.bf16.mxu0 %v1917_v0 }
 0x32d   :  { %1610 = vmatpush3.bf16.msra.mxu0 %v1748_v46 }
 0x32e   :  { %1611 = vmatprep.subr.bf16.mxu0 %v1917_v0 }
 0x331   :  { %1612 = vmatpush3.bf16.msra.mxu0 %v1749_v47  ;;  %v230_v47 = vadd.f32 %v2071_v57, %v2054_v42 }
 0x332   :  { %1613 = vmatprep.subr.bf16.mxu0 %v1917_v0 }
 0x335   :  { %1614 = vmatpush3.bf16.msra.mxu0 %v1750_v48 }
 0x336   :  { %1639 = vmatprep.subr.bf16.mxu0 %v1917_v0 }
 0x3eb   :  { %v672_v37 = vpop.f32.mrb[12].mxu0 }
 0x3ec   :  { %v678_v38 = vadd.f32 %v672_v37, %v214_v36  ;;  %v1577_v39 = vpop.f32.mrb[13].mxu0 }
 0x3ed   :  { %v675_v40 = vpop.f32.mrb[14].mxu0  ;;  %v1370_v39 = vld [vmem:[%s2182_s5] ss:$0 sm:$0xff]  ;;  %s1920_s5 = smov [#allocation12]  }
 0x3ee   :  { %1781 = vtanh.f32 %v678_v38  ;;  %v1578_v41 = vpop.f32.mrb[15].mxu0  ;;  %s1283_s25 = sshll.u32 %s1920_s5, 4  ;;  %s1284_s25 = int_to_ptr.vmem [resolvable:$true] %s1283_s25 }
 0x3ef   :  { %s1879_s26 = scalar_lea.vmem %s1284_s25, 1024  ;;  %p1884_p5 = scmp.lt.s32.totalorder %s1284_s25, %s1284_s25 }
 0x3f0   :  { %p1880_p4 = scmp.ne.s32.totalorder %s1284_s25, %s1879_s26  ;;  %p1885_p6 = scmp.lt.s32.totalorder %s1879_s26, %s1879_s26 }
 0x3f2   :  { %p1886_p7 = por %p1885_p6, %p1884_p5 }
 0x3f4   :  { %p1887_p8 = pnand %p1886_p7, %p1880_p4 }
 0x3f8   :  { %v2116_v43 = vpop.eup %1781 }
 0x3f9   :  { %v683_v44 = vpack.c.bf16 %v2116_v43, %v2116_v43  ;;  %v1131_v10 = vpack.c.bf16 %v2116_v43, %v2100_v26  ;;  %v227_v26 = vadd.f32 %v2067_v55, %v2054_v42 }
 0x3fb   :  { %1596 = vmatmul.mubr.bf16.vlgmr.msra.gmra.mrb[8].mxu1 %v683_v44 }
 0x3fc   :  { %1635 = vmatprep.mubr.msk.bf16.mxu1 %vm1918_vm0, %v1917_v0  ;;  %1620 = vmatpush3.bf16.msra.mxu1 %v1751_v49 }
 0x3fd   :  { %1621 = vmatprep.subr.bf16.mxu1 %v1917_v0 }
 0x400   :  { %1622 = vmatpush3.bf16.msra.mxu1 %v1752_v50 }
 0x401   :  { %1623 = vmatprep.subr.bf16.mxu1 %v1917_v0 }
 0x404   :  { %1624 = vmatpush3.bf16.msra.mxu1 %v1753_v51 }
 0x405   :  { %1625 = vmatprep.subr.bf16.mxu1 %v1917_v0 }
 0x408   :  { %1626 = vmatpush3.bf16.msra.mxu1 %v1754_v52 }
 0x409   :  { %1627 = vmatprep.subr.bf16.mxu1 %v1917_v0 }
 0x40c   :  { %1628 = vmatpush3.bf16.msra.mxu1 %v1755_v3 }
 0x40d   :  { %1629 = vmatprep.subr.bf16.mxu1 %v1917_v0 }
 0x410   :  { %1630 = vmatpush3.bf16.msra.mxu1 %v1756_v56 }
 0x411   :  { %1631 = vmatprep.subr.bf16.mxu1 %v1917_v0 }
 0x414   :  { %1632 = vmatpush3.bf16.msra.mxu1 %v1757_v4 }
 0x415   :  { %1633 = vmatprep.subr.bf16.mxu1 %v1917_v0 }
 0x418   :  { %1634 = vmatpush3.bf16.msra.mxu1 %v1758_v5 }
 0x419   :  { %1659 = vmatprep.subr.bf16.mxu1 %v1759_v6 }
 0x4ce   :  { %v782_v59 = vpop.f32.mrb[8].mxu1 }
 0x4cf   :  { %v788_v60 = vadd.f32 %v782_v59, %v219_v54  ;;  %v1597_v61 = vpop.f32.mrb[9].mxu1 }
 0x4d0   :  { %v785_v62 = vpop.f32.mrb[10].mxu1 }
 0x4d1   :  { %1783 = vtanh.f32 %v788_v60  ;;  %v1598_v63 = vpop.f32.mrb[11].mxu1 }
 0x4db   :  { %v2132_v1 = vpop.eup %1783 }
 0x4dc   :  { %v793_v2 = vpack.c.bf16 %v2132_v1, %v2132_v1 }
 0x4de   :  { %1616 = vmatmul.mubr.bf16.vlgmr.msra.gmra.mrb[16].mxu0 %v793_v2 }
 0x4df   :  { %1655 = vmatprep.mubr.msk.bf16.mxu0 %vm1918_vm0, %v1917_v0  ;;  %1640 = vmatpush3.bf16.msra.mxu0 %v1767_v7 }
 0x4e0   :  { %1641 = vmatprep.subr.bf16.mxu0 %v1917_v0 }
 0x4e3   :  { %1642 = vmatpush3.bf16.msra.mxu0 %v1768_v8 }
 0x4e4   :  { %1643 = vmatprep.subr.bf16.mxu0 %v1917_v0 }
 0x4e7   :  { %1644 = vmatpush3.bf16.msra.mxu0 %v1769_v9 }
 0x4e8   :  { %1645 = vmatprep.subr.bf16.mxu0 %v1917_v0 }
 0x4eb   :  { %1646 = vmatpush3.bf16.msra.mxu0 %v1770_v11 }
 0x4ec   :  { %1647 = vmatprep.subr.bf16.mxu0 %v1917_v0 }
 0x4ef   :  { %1648 = vmatpush3.bf16.msra.mxu0 %v1771_v28 }
 0x4f0   :  { %1649 = vmatprep.subr.bf16.mxu0 %v1917_v0 }
 0x4f3   :  { %1650 = vmatpush3.bf16.msra.mxu0 %v1772_v29 }
 0x4f4   :  { %1651 = vmatprep.subr.bf16.mxu0 %v1917_v0 }
 0x4f7   :  { %1652 = vmatpush3.bf16.msra.mxu0 %v1773_v30 }
 0x4f8   :  { %1653 = vmatprep.subr.bf16.mxu0 %v1917_v0 }
 0x4fb   :  { %1654 = vmatpush3.bf16.msra.mxu0 %v1774_v31 }
 0x5b1   :  { %v892_v13 = vpop.f32.mrb[16].mxu0 }
 0x5b2   :  { %v898_v14 = vadd.f32 %v892_v13, %v222_v12  ;;  %v1617_v15 = vpop.f32.mrb[17].mxu0 }
 0x5b3   :  { %v895_v16 = vpop.f32.mrb[18].mxu0 }
 0x5b4   :  { %1785 = vtanh.f32 %v898_v14  ;;  %v1618_v17 = vpop.f32.mrb[19].mxu0 }
 0x5be   :  { %v1786_v18 = vpop.eup %1785 }
 0x5bf   :  { %v903_v19 = vpack.c.bf16 %v1786_v18, %v1786_v18  ;;  %v1132_v27 = vpack.c.bf16 %v1786_v18, %v2132_v1 }
 0x5c1   :  { %1636 = vmatmul.mubr.bf16.vlgmr.msra.gmra.mrb[12].mxu1 %v903_v19 }
 0x5c2   :  { %1660 = vmatpush3.bf16.msra.mxu1 %v1759_v6  ;;  %1675 = vmatprep.mubr.bf16.mxu1 %v1130_v21 }
 0x5c3   :  { %1661 = vmatprep.subr.bf16.mxu1 %v1760_v20 }
 0x5c6   :  { %1662 = vmatpush3.bf16.msra.mxu1 %v1760_v20 }
 0x5c7   :  { %1663 = vmatprep.subr.bf16.mxu1 %v1761_v22 }
 0x5ca   :  { %1664 = vmatpush3.bf16.msra.mxu1 %v1761_v22 }
 0x5cb   :  { %1665 = vmatprep.subr.bf16.mxu1 %v1762_v58 }
 0x5ce   :  { %1666 = vmatpush3.bf16.msra.mxu1 %v1762_v58 }
 0x5cf   :  { %1667 = vmatprep.subr.bf16.mxu1 %v1763_v23 }
 0x5d2   :  { %1668 = vmatpush3.bf16.msra.mxu1 %v1763_v23 }
 0x5d3   :  { %1669 = vmatprep.subr.bf16.mxu1 %v1764_v24 }
 0x5d6   :  { %1670 = vmatpush3.bf16.msra.mxu1 %v1764_v24 }
 0x5d7   :  { %1671 = vmatprep.subr.bf16.mxu1 %v1765_v25 }
 0x5da   :  { %1672 = vmatpush3.bf16.msra.mxu1 %v1765_v25 }
 0x5db   :  { %1673 = vmatprep.subr.bf16.mxu1 %v1766_v53 }
 0x5de   :  { %1674 = vmatpush3.bf16.msra.mxu1 %v1766_v53 }
 0x5e1   :  { %1676 = vmatmul.mubr.bf16.vlgmr.msra.gmra.mrb[16].mxu1 %v1131_v10 }
 0x5e2   :  { %1679 = vmatprep.mubr.bf16.mxu1 %v1132_v27 }
 0x694   :  { %v1002_v32 = vpop.f32.mrb[12].mxu1 }
 0x695   :  { %v1008_v33 = vadd.f32 %v1002_v32, %v227_v26  ;;  %v1637_v34 = vpop.f32.mrb[13].mxu1 }
 0x696   :  { %v1005_v35 = vpop.f32.mrb[14].mxu1 }
 0x697   :  { %1787 = vtanh.f32 %v1008_v33  ;;  %v1638_v36 = vpop.f32.mrb[15].mxu1 }
 0x6a1   :  { %v1788_v37 = vpop.eup %1787 }
 0x6a2   :  { %v1013_v38 = vpack.c.bf16 %v1788_v37, %v1788_v37 }
 0x6a4   :  { %1656 = vmatmul.mubr.bf16.vlgmr.msra.gmra.mrb[20].mxu0 %v1013_v38 }
 0x6b4   :  { %v1677_v40 = vpop.f32.mrb[16].mxu1 }
 0x6b5   :  { %v1248_v41 = vadd.f32 %v1677_v40, %v1370_v39  ;;  %v1239_v0 = vpop.f32.mrb[17].mxu1 }
 0x6b6   :  { %v1240_v43 = vadd.f32 %v1370_v39, %v1239_v0  ;;  %v1678_v44 = vpop.f32.mrb[18].mxu1 }
 0x6b7   :  { %1272 = vst [vmem:[#allocation12 + $0x10] sm:$0xff] %v1248_v41  ;;  %v1251_v55 = vadd.f32 %v1678_v44, %v1370_v39  ;;  %v1242_v45 = vpop.f32.mrb[19].mxu1 }
 0x6b8   :  { %1270 = vst [vmem:[#allocation12] sm:$0xff] %v1240_v43  ;;  %v1243_v46 = vadd.f32 %v1370_v39, %v1242_v45 }
 0x6b9   :  { %1273 = vst [vmem:[#allocation12 + $0x18] sm:$0xff] %v1251_v55 }
 0x6ba   :  { %1271 = vst [vmem:[#allocation12 + $0x8] sm:$0xff] %v1243_v46 }
 0x777   :  { %v1112_v48 = vpop.f32.mrb[20].mxu0 }
 0x778   :  { %v1118_v49 = vadd.f32 %v1112_v48, %v230_v47  ;;  %v1657_v50 = vpop.f32.mrb[21].mxu0 }
 0x779   :  { %v1115_v51 = vpop.f32.mrb[22].mxu0 }
 0x77a   :  { %1789 = vtanh.f32 %v1118_v49  ;;  %v1658_v52 = vpop.f32.mrb[23].mxu0 }
 0x784   :  { %v1790_v54 = vpop.eup %1789 }
 0x785   :  { %v1133_v59 = vpack.c.bf16 %v1790_v54, %v1788_v37 }
 0x787   :  { %1680 = vmatmul.mubr.bf16.gmra.mrb[20].mxu1 %v1133_v59 }
 0x85a   :  { %v1681_v60 = vpop.f32.mrb[20].mxu1 }
 0x85b   :  { %v1264_v61 = vadd.f32 %v1681_v60, %v1370_v39  ;;  %v1255_v62 = vpop.f32.mrb[21].mxu1 }
 0x85c   :  { %v1256_v63 = vadd.f32 %v1370_v39, %v1255_v62  ;;  %v1682_v1 = vpop.f32.mrb[22].mxu1 }
 0x85d   :  { %1276 = vst [vmem:[#allocation12 + $0x30] sm:$0xff] %v1264_v61  ;;  %v1267_v2 = vadd.f32 %v1682_v1, %v1370_v39  ;;  %v1258_v3 = vpop.f32.mrb[23].mxu1 }
 0x85e   :  { %1274 = vst [vmem:[#allocation12 + $0x20] sm:$0xff] %v1256_v63  ;;  %v1259_v42 = vadd.f32 %v1370_v39, %v1258_v3 }
 0x85f   :  { %1277 = vst [vmem:[#allocation12 + $0x38] sm:$0xff] %v1267_v2 }
 0x860   :  { %1275 = vst [vmem:[#allocation12 + $0x28] sm:$0xff] %v1259_v42 }
 0x861   :  { %1890 = shalt.err (!%p1887_p8)
}
 0x862   :  { %s1891_s29 = scalar_lea.hbm %s2183_s6, 1024 }
 0x863   :  { %p1892_p9 = scmp.ne.s32.totalorder %s2183_s6, %s1891_s29  ;;  %p1895_p10 = scmp.lt.u32.totalorder %s1891_s29, %s2183_s6 }
 0x865   :  { %p1897_p11 = pnand %p1895_p10, %p1892_p9 }
 0x867   :  { %1900 = shalt.err (!%p1897_p11)
}
 0x868   :  { %1289 = dma.vmem_to_hbm [thread:$0]  %s1284_s25, 1024, %s2183_s6, [#allocation6], %s1913_s1, %s1913_s1, %s1914_s21  }
 0x869   :  { %1907 = dma.done.wait [#allocation6], 1024  }
 0x86a   :  { %1908 = vsyncadd [#allocation6], 4294966272 }
 0x86b   :  { %1293 = vsyncpa [#allocation5], 1 }
 0x86c   :  { %1294 = vsyncpa [#allocation8], 1 }
 0x86d   :  { %1295 = vsyncpa [#allocation11], 1 }
 0x86e   :  { %1296 = vsyncpa [#allocation6], 1 }

</bundles_post_ra>
